<compile_context>
chip_gen: v6e
topology: v6e:2x2x1
jax: 0.10.0
libtpu: 0.0.40
codegen_flags: <defaults>
</compile_context>

<pallas_src>
import functools

import jax
import jax.numpy as jnp
from jax.experimental import pallas as pl
from jax.experimental.pallas import tpu as pltpu

IN_F = 324        # real input features
OUT_F = 20        # real output classes
OUT_P = 128       # padded class axis used for the in-kernel softmax math
_NEG_LARGE = -1e30


def _round_up(a, m):
    return (a + m - 1) // m * m


def _cdiv(a, b):
    return -(-a // b)


def _mlp_kernel(x_ref, w1_ref, b1_ref, w2_ref, b2_ref, o_ref):
    # Cast x to bf16 on the VPU (huge slack); MXU accumulates in f32.
    x = x_ref[...].astype(jnp.bfloat16)

    # Hidden layer: x @ W1 + b1, ReLU.  K=324 is padded internally by Mosaic.
    h = jnp.dot(x, w1_ref[...], preferred_element_type=jnp.float32)
    h = jnp.maximum(h + b1_ref[...], 0.0)

    # Dropout(p=0.5) in eval mode -> identity.
    # TODO(synk): training-mode stochastic dropout (p=0.5) via pltpu.prng_* masking.

    # Output layer: h @ W2 + b2 over a 128-lane-dense class axis.  Padded logit
    # columns carry b2 = -1e30 so exp() underflows to 0 and they never affect
    # max / logsumexp.
    logits = jnp.dot(h.astype(jnp.bfloat16), w2_ref[...],
                     preferred_element_type=jnp.float32) + b2_ref[...]

    # Numerically-stable log_softmax along the class axis (XLU reduce + EUP exp:
    # both have slack in this mem-bound kernel).
    m = jnp.max(logits, axis=1, keepdims=True)
    s = logits - m
    lse = jnp.log(jnp.sum(jnp.exp(s), axis=1, keepdims=True))
    # Store only the 20 real class columns (narrow but contiguous HBM write).
    o_ref[...] = (s - lse)[:, :OUT_F].astype(o_ref.dtype)


def pad_params(w1, b1, w2, b2):
    """Pad params to lane-friendly shapes and cast weights to bf16.

    w1: (324, nn) -> (324, nn_p) bf16 (zero pad)
    b1: (1, nn)   -> (1, nn_p)   f32  (zero pad)
    w2: (nn, 20)  -> (nn_p, 128) bf16 (zero pad)
    b2: (1, 20)   -> (1, 128)    f32  (pad columns set to -1e30)
    """
    nn = w1.shape[1]
    nn_p = _round_up(max(nn, 8), 128)
    w1_p = jnp.zeros((IN_F, nn_p), jnp.bfloat16).at[:, :nn].set(
        w1.astype(jnp.bfloat16))
    b1_p = jnp.zeros((1, nn_p), jnp.float32).at[:, :nn].set(
        b1.reshape(1, nn).astype(jnp.float32))
    w2_p = jnp.zeros((nn_p, OUT_P), jnp.bfloat16).at[:nn, :OUT_F].set(
        w2.astype(jnp.bfloat16))
    b2_p = jnp.full((1, OUT_P), _NEG_LARGE, jnp.float32).at[:, :OUT_F].set(
        b2.reshape(1, OUT_F).astype(jnp.float32))
    return w1_p, b1_p, w2_p, b2_p


@functools.partial(jax.jit, static_argnames=("tile_b",))
def simple_forward(x, w1, b1, w2, b2, tile_b=4096):
    """Eval-mode forward of `simple`. x: (B, 324) f32 -> (B, 20) f32 log-probs."""
    B = x.shape[0]
    w1_p, b1_p, w2_p, b2_p = pad_params(w1, b1, w2, b2)
    nn_p = w1_p.shape[1]

    # Padding-aware batch tiling:
    #   * >= 2 grid steps when B >= 16 so "parallel" can shard across v7x's 2 TCs,
    #   * tb is a multiple of 8 sublanes and chosen to minimise wasted rows,
    #   * boundary blocks are clipped by Pallas (OOB reads undefined but only feed
    #     rows that are never written back; OOB writes are dropped), so no
    #     wrapper-side pad or cast pass over x is needed.
    n_steps = max(_cdiv(B, tile_b), 2 if B >= 16 else 1)
    tb = _round_up(_cdiv(B, n_steps), 8)
    grid = (n_steps,)

    flops = 2 * B * (IN_F * nn_p + nn_p * OUT_P)
    bytes_accessed = (x.size * 4 + B * OUT_F * 4
                      + (w1_p.size + w2_p.size) * 2
                      + (b1_p.size + b2_p.size) * 4)

    return pl.pallas_call(
        _mlp_kernel,
        out_shape=jax.ShapeDtypeStruct((B, OUT_F), jnp.float32),
        grid=grid,
        in_specs=[
            pl.BlockSpec((tb, IN_F), lambda i: (i, 0)),      # x: tiled over batch, f32
            pl.BlockSpec((IN_F, nn_p), lambda i: (0, 0)),    # W1: VMEM-resident
            pl.BlockSpec((1, nn_p), lambda i: (0, 0)),       # b1: VMEM-resident
            pl.BlockSpec((nn_p, OUT_P), lambda i: (0, 0)),   # W2: VMEM-resident
            pl.BlockSpec((1, OUT_P), lambda i: (0, 0)),      # b2: VMEM-resident
        ],
        out_specs=pl.BlockSpec((tb, OUT_F), lambda i: (i, 0)),
        compiler_params=pltpu.CompilerParams(
            dimension_semantics=("parallel",),
            # Fits tb=4096 f32 x tiles (double-buffered) on every generation:
            # above v5e's 16 MiB scoped default, within v7x's 64 MiB physical.
            vmem_limit_bytes=32 * 1024 * 1024,
        ),
        cost_estimate=pl.CostEstimate(
            flops=flops,
            transcendentals=B * (OUT_P + 1),
            bytes_accessed=bytes_accessed,
        ),
    )(x, w1_p, b1_p, w2_p, b2_p)


def init_params(key, nn=100, in_features=IN_F, out_features=OUT_F):
    """Deterministic init mimicking torch.nn.Linear (uniform +/- 1/sqrt(fan_in)).

    Weights stored as (in, out), i.e. transposed vs PyTorch's (out, in)."""
    k1, k2, k3, k4 = jax.random.split(key, 4)
    bound1 = 1.0 / (in_features ** 0.5)
    bound2 = 1.0 / (nn ** 0.5)
    w1 = jax.random.uniform(k1, (in_features, nn), jnp.float32, -bound1, bound1)
    b1 = jax.random.uniform(k2, (1, nn), jnp.float32, -bound1, bound1)
    w2 = jax.random.uniform(k3, (nn, out_features), jnp.float32, -bound2, bound2)
    b2 = jax.random.uniform(k4, (1, out_features), jnp.float32, -bound2, bound2)
    return w1, b1, w2, b2


def _ref_forward_f32(x, w1, b1, w2, b2):
    """Pure-f32 reference of the PyTorch module (eval mode)."""
    h = jnp.maximum(x @ w1 + b1, 0.0)
    return jax.nn.log_softmax(h @ w2 + b2, axis=1)


def _ref_forward_bf16_matched(x, w1, b1, w2, b2):
    """Reference mirroring the kernel's bf16-operand / f32-accumulate math."""
    hp = jax.lax.Precision.HIGHEST
    xb = x.astype(jnp.bfloat16).astype(jnp.float32)
    w1b = w1.astype(jnp.bfloat16).astype(jnp.float32)
    w2b = w2.astype(jnp.bfloat16).astype(jnp.float32)
    h = jnp.maximum(jnp.dot(xb, w1b, precision=hp) + b1, 0.0)
    hb = h.astype(jnp.bfloat16).astype(jnp.float32)
    logits = jnp.dot(hb, w2b, precision=hp) + b2
    return jax.nn.log_softmax(logits, axis=1)


def _check(x, w1, b1, w2, b2):
    out = jax.block_until_ready(simple_forward(x, w1, b1, w2, b2))
    B = x.shape[0]
    assert out.shape == (B, OUT_F)
    ref_bf16 = _ref_forward_bf16_matched(x, w1, b1, w2, b2)
    assert jnp.allclose(out, ref_bf16, atol=2e-3, rtol=2e-3)
    ref_f32 = _ref_forward_f32(x, w1, b1, w2, b2)
    assert jnp.allclose(out, ref_f32, atol=5e-2, rtol=0.0)
    # log_softmax rows must exponentiate-sum to 1 over the 20 real classes.
    assert jnp.allclose(jnp.sum(jnp.exp(out), axis=1), jnp.ones((B,)), atol=1e-3)
    return out


if __name__ == "__main__":
    key = jax.random.PRNGKey(0)
    kx, kx2, kp = jax.random.split(key, 3)

    NN = 100
    w1, b1, w2, b2 = init_params(kp, nn=NN)

    # Single-step grid (B=8 divides evenly into one 8-row tile).
    x_small = jax.random.normal(kx, (8, IN_F), dtype=jnp.float32)
    _check(x_small, w1, b1, w2, b2)

    # Two-step grid with a clipped boundary block (B=20 -> tb=16, grid=(2,)),
    # exercising the non-divisible / dropped-OOB-write path.
    x_ragged = jax.random.normal(kx2, (20, IN_F), dtype=jnp.float32)
    _check(x_ragged, w1, b1, w2, b2)

    print("KERNEL_OK")
</pallas_src>

<mosaic_0001>
module attributes {stable_mosaic.version = 11 : i64} {
  func.func @_mlp_kernel(%arg0: i32, %arg1: memref<8x324xf32, #tpu.memory_space<vmem>>, %arg2: memref<324x128xbf16, #tpu.memory_space<vmem>>, %arg3: memref<1x128xf32, #tpu.memory_space<vmem>>, %arg4: memref<128x128xbf16, #tpu.memory_space<vmem>>, %arg5: memref<1x128xf32, #tpu.memory_space<vmem>>, %arg6: memref<8x20xf32, #tpu.memory_space<vmem>>) attributes {dimension_semantics = [#tpu.dimension_semantics<parallel>], iteration_bounds = array<i64: 1>, scalar_prefetch = 0 : i64, scratch_operands = 0 : i64, tpu.core_type = #tpu.core_type<tc>, window_params = [{transform_indices = @transform_0, window_bounds = array<i64: 8, 324>}, {pipeline_mode = #tpu.pipeline_mode<synchronous>, transform_indices = @transform_1, window_bounds = array<i64: 324, 128>}, {pipeline_mode = #tpu.pipeline_mode<synchronous>, transform_indices = @transform_2, window_bounds = array<i64: 1, 128>}, {pipeline_mode = #tpu.pipeline_mode<synchronous>, transform_indices = @transform_3, window_bounds = array<i64: 128, 128>}, {pipeline_mode = #tpu.pipeline_mode<synchronous>, transform_indices = @transform_4, window_bounds = array<i64: 1, 128>}, {transform_indices = @transform_5, window_bounds = array<i64: 8, 20>}]} {
    %c0 = arith.constant 0 : index
    %c0_0 = arith.constant 0 : index
    %0 = vector.load %arg1[%c0, %c0_0] : memref<8x324xf32, #tpu.memory_space<vmem>>, vector<8x324xf32>
    %1 = arith.truncf %0 : vector<8x324xf32> to vector<8x324xbf16>
    %c0_1 = arith.constant 0 : index
    %c0_2 = arith.constant 0 : index
    %2 = vector.load %arg2[%c0_1, %c0_2] : memref<324x128xbf16, #tpu.memory_space<vmem>>, vector<324x128xbf16>
    %cst = arith.constant dense<0.000000e+00> : vector<8x128xf32>
    %3 = tpu.matmul %1, %2, %cst {dimension_numbers = #tpu.dot_dimension_numbers<[1], [0], [0], [1], [0, 0, 1, 1], [], []>} : vector<8x324xbf16>, vector<324x128xbf16>, vector<8x128xf32> -> vector<8x128xf32>
    %c0_3 = arith.constant 0 : index
    %c0_4 = arith.constant 0 : index
    %4 = vector.load %arg3[%c0_3, %c0_4] : memref<1x128xf32, #tpu.memory_space<vmem>>, vector<1x128xf32>
    %5 = vector.broadcast %4 : vector<1x128xf32> to vector<8x128xf32>
    %6 = arith.addf %3, %5 : vector<8x128xf32>
    %cst_5 = arith.constant 0.000000e+00 : f32
    %7 = vector.broadcast %cst_5 : f32 to vector<8x128xf32>
    %8 = arith.maximumf %6, %7 : vector<8x128xf32>
    %9 = arith.truncf %8 : vector<8x128xf32> to vector<8x128xbf16>
    %c0_6 = arith.constant 0 : index
    %c0_7 = arith.constant 0 : index
    %10 = vector.load %arg4[%c0_6, %c0_7] : memref<128x128xbf16, #tpu.memory_space<vmem>>, vector<128x128xbf16>
    %cst_8 = arith.constant dense<0.000000e+00> : vector<8x128xf32>
    %11 = tpu.matmul %9, %10, %cst_8 {dimension_numbers = #tpu.dot_dimension_numbers<[1], [0], [0], [1], [0, 0, 1, 1], [], []>} : vector<8x128xbf16>, vector<128x128xbf16>, vector<8x128xf32> -> vector<8x128xf32>
    %c0_9 = arith.constant 0 : index
    %c0_10 = arith.constant 0 : index
    %12 = vector.load %arg5[%c0_9, %c0_10] : memref<1x128xf32, #tpu.memory_space<vmem>>, vector<1x128xf32>
    %13 = vector.broadcast %12 : vector<1x128xf32> to vector<8x128xf32>
    %14 = arith.addf %11, %13 : vector<8x128xf32>
    %cst_11 = arith.constant dense<0xFF800000> : vector<8xf32>
    %15 = vector.multi_reduction <maximumf>, %14, %cst_11 [1] : vector<8x128xf32> to vector<8xf32>
    %16 = vector.shape_cast %15 : vector<8xf32> to vector<8x1xf32>
    %17 = vector.broadcast %16 : vector<8x1xf32> to vector<8x128xf32>
    %18 = arith.subf %14, %17 : vector<8x128xf32>
    %19 = math.exp %18 : vector<8x128xf32>
    %cst_12 = arith.constant dense<0.000000e+00> : vector<8xf32>
    %20 = vector.multi_reduction <add>, %19, %cst_12 [1] : vector<8x128xf32> to vector<8xf32>
    %21 = vector.shape_cast %20 : vector<8xf32> to vector<8x1xf32>
    %22 = math.log %21 : vector<8x1xf32>
    %23 = vector.broadcast %22 : vector<8x1xf32> to vector<8x128xf32>
    %24 = arith.subf %18, %23 : vector<8x128xf32>
    %25 = vector.extract_strided_slice %24 {offsets = [0, 0], sizes = [8, 20], strides = [1, 1]} : vector<8x128xf32> to vector<8x20xf32>
    %c0_13 = arith.constant 0 : index
    %c0_14 = arith.constant 0 : index
    %26 = vector.load %arg6[%c0_13, %c0_14] : memref<8x20xf32, #tpu.memory_space<vmem>>, vector<8x20xf32>
    tpu.vector_store %arg6[%c0_13, %c0_14], %25 {strides = array<i32>} : memref<8x20xf32, #tpu.memory_space<vmem>>, vector<8x20xf32>,
    return
  }
  func.func @transform_0(%arg0: i32) -> (i32, i32) {
    %c0_i32 = arith.constant 0 : i32
    %c0_i32_0 = arith.constant 0 : i32
    return %arg0, %c0_i32 : i32, i32
  }
  func.func @transform_1(%arg0: i32) -> (i32, i32) {
    %c0_i32 = arith.constant 0 : i32
    %c0_i32_0 = arith.constant 0 : i32
    %c0_i32_1 = arith.constant 0 : i32
    return %c0_i32, %c0_i32_0 : i32, i32
  }
  func.func @transform_2(%arg0: i32) -> (i32, i32) {
    %c0_i32 = arith.constant 0 : i32
    %c0_i32_0 = arith.constant 0 : i32
    %c0_i32_1 = arith.constant 0 : i32
    return %c0_i32, %c0_i32_0 : i32, i32
  }
  func.func @transform_3(%arg0: i32) -> (i32, i32) {
    %c0_i32 = arith.constant 0 : i32
    %c0_i32_0 = arith.constant 0 : i32
    %c0_i32_1 = arith.constant 0 : i32
    return %c0_i32, %c0_i32_0 : i32, i32
  }
  func.func @transform_4(%arg0: i32) -> (i32, i32) {
    %c0_i32 = arith.constant 0 : i32
    %c0_i32_0 = arith.constant 0 : i32
    %c0_i32_1 = arith.constant 0 : i32
    return %c0_i32, %c0_i32_0 : i32, i32
  }
  func.func @transform_5(%arg0: i32) -> (i32, i32) {
    %c0_i32 = arith.constant 0 : i32
    %c0_i32_0 = arith.constant 0 : i32
    return %arg0, %c0_i32 : i32, i32
  }
}

</mosaic_0001>

<bundles_post_ra>
// kernel: simple_forward.1
= control target key start
LH: loop header
LB: loop body
LE: loop exit
PB: predicated region body
PF: predicated region fallthrough
CT: control target
= control target key end

     0   :  { %v587_v2 = vmov 0.0   ;;  %vm588_vm0 = vmmov 0   ;;  %vm203_vm1 = vcmask 1041408   ;;  %vm199_vm2 = vcmask 556032   ;;  %s742_s0 = inlined_call_operand.vmem [shape: f32[8,324], index: 0, kind: input, shape index: {}]   ;;  %s743_s1 = inlined_call_operand.vmem [shape: bf16[324,128], index: 1, kind: input, shape index: {}]   ;;  %s744_s2 = inlined_call_operand.vmem [shape: f32[1,128], index: 2, kind: input, shape index: {}]   ;;  %s745_s3 = inlined_call_operand.vmem [shape: bf16[128,128], index: 3, kind: input, shape index: {}]   ;;  %s746_s4 = inlined_call_operand.vmem [shape: f32[1,128], index: 4, kind: input, shape index: {}]   ;;  %s747_s5 = inlined_call_operand.hbm [shape: f32[8,20], index: 5, kind: output, shape index: {}]  }
   0x1   :  { %v532_v0 = vld [vmem:[%s743_s1 + $0x78] sm:$0xff]   ;;  %495 = vmatprep.subr.bf16.mxu1 %v587_v2  ;;  %v534_v3 = vld [vmem:[%s743_s1 + $0x70] sm:$0xff]   ;;  %505 = vmatprep.mubr.msk.bf16.mxu1 %vm588_vm0, %v587_v2  ;;  %v536_v5 = vld [vmem:[%s743_s1 + $0x68] sm:$0xff]  }
   0x2   :  { %v533_v1 = vld [vmem:[%s743_s1 + $0x38] sm:$0xff]   ;;  %458 = vmatprep.subr.bf16.mxu0 %v532_v0  ;;  %v535_v4 = vld [vmem:[%s743_s1 + $0x30] sm:$0xff]   ;;  %v537_v6 = vld [vmem:[%s743_s1 + $0x28] sm:$0xff]  }
   0x3   :  { %459 = vmatpush3.bf16.msra.mxu0 %v533_v1  ;;  %v538_v7 = vld [vmem:[%s743_s1 + $0x60] sm:$0xff]   ;;  %v543_v11 = vld [vmem:[%s743_s1 + $0x98] sm:$0xff]   ;;  %v546_v14 = vld [vmem:[%s743_s1 + $0x90] sm:$0xff]  }
   0x4   :  { %460 = vmatprep.subr.bf16.mxu0 %v534_v3  ;;  %v540_v8 = vld [vmem:[%s743_s1 + $0xa0] ss:$0 sps:$4 sm:$0x33]   ;;  %v541_v12 = vld [vmem:[%s743_s1 + $0x58] sm:$0xff]   ;;  %v544_v15 = vld [vmem:[%s743_s1 + $0x50] sm:$0xff]  }
   0x5   :  { %v539_v9 = vld [vmem:[%s743_s1 + $0x20] sm:$0xff]   ;;  %v205_v10 = vsel %vm203_vm1, %v540_v8, 0  ;;  %v542_v13 = vld [vmem:[%s743_s1 + $0x18] sm:$0xff]   ;;  %v545_v16 = vld [vmem:[%s743_s1 + $0x10] sm:$0xff]  }
   0x6   :  { %496 = vmatpush3.bf16.msra.mxu1 %v205_v10  ;;  %v549_v17 = vld [vmem:[%s743_s1 + $0x88] sm:$0xff]   ;;  %v552_v22 = vld [vmem:[%s743_s1 + $0x80] sm:$0xff]   ;;  %v24_v23 = vld [vmem:[%s742_s0 + $0x10] sm:$0xff] }
   0x7   :  { %461 = vmatpush3.bf16.msra.mxu0 %v535_v4  ;;  %497 = vmatprep.subr.bf16.mxu1 %v587_v2  ;;  %v547_v18 = vld [vmem:[%s743_s1 + $0x48] sm:$0xff]   ;;  %v550_v24 = vld [vmem:[%s743_s1 + $0x40] sm:$0xff]   ;;  %v27_v27 = vpack.c.bf16 %v24_v23, %v24_v23  ;;  %v553_v28 = vld [vmem:[%s745_s3 + $0x38] sm:$0xff]  }
   0x8   :  { %462 = vmatprep.subr.bf16.mxu0 %v536_v5  ;;  %v23_v19 = vld [vmem:[%s742_s0 + $0x8] sm:$0xff]  ;;  %v551_v25 = vld [vmem:[%s743_s1] sm:$0xff]  }
   0x9   :  { %v548_v20 = vld [vmem:[%s743_s1 + $0x8] sm:$0xff]   ;;  %v26_v21 = vpack.c.bf16 %v23_v19, %v23_v19  ;;  %v22_v26 = vld [vmem:[%s742_s0] sm:$0xff] }
   0xa   :  { %498 = vmatpush3.bf16.msra.mxu1 %v543_v11 }
   0xb   :  { %463 = vmatpush3.bf16.msra.mxu0 %v537_v6  ;;  %499 = vmatprep.subr.bf16.mxu1 %v587_v2 }
   0xc   :  { %464 = vmatprep.subr.bf16.mxu0 %v538_v7  ;;  %239 = vmatprep.mubr.bf16.mxu0 %v26_v21 }
   0xe   :  { %500 = vmatpush3.bf16.msra.mxu1 %v546_v14 }
   0xf   :  { %465 = vmatpush3.bf16.msra.mxu0 %v539_v9  ;;  %501 = vmatprep.subr.bf16.mxu1 %v587_v2 }
  0x10   :  { %466 = vmatprep.subr.bf16.mxu0 %v541_v12 }
  0x12   :  { %502 = vmatpush3.bf16.msra.mxu1 %v549_v17 }
  0x13   :  { %467 = vmatpush3.bf16.msra.mxu0 %v542_v13  ;;  %503 = vmatprep.subr.bf16.mxu1 %v587_v2 }
  0x14   :  { %468 = vmatprep.subr.bf16.mxu0 %v544_v15 }
  0x16   :  { %504 = vmatpush3.bf16.msra.mxu1 %v552_v22 }
  0x17   :  { %469 = vmatpush3.bf16.msra.mxu0 %v545_v16  ;;  %509 = vmatprep.subr.bf16.mxu1 %v587_v2 }
  0x18   :  { %470 = vmatprep.subr.bf16.mxu0 %v547_v18 }
  0x1b   :  { %471 = vmatpush3.bf16.msra.mxu0 %v548_v20 }
  0x1c   :  { %472 = vmatprep.subr.bf16.mxu0 %v550_v24 }
  0x1d   :  { %10 = vsyncpa [#allocation3], 0  ;;  %v25_v29 = vpack.c.bf16 %v22_v26, %v22_v26  ;;  %506 = vmatmul.mubr.msk.bf16.vlgmr.msra.gmra.mxu1 %vm199_vm2, %v27_v27  ;;  %v554_v30 = vld [vmem:[%s745_s3 + $0x30] sm:$0xff]   ;;  %v555_v31 = vld [vmem:[%s745_s3 + $0x28] sm:$0xff]   ;;  %vm410_vm3 = vcmask 162816  }
  0x1e   :  { %510 = vmatpush3.bf16.msra.mxu1 %v553_v28  ;;  %525 = vmatprep.mubr.msk.bf16.mxu1 %vm588_vm0, %v587_v2  ;;  %v556_v32 = vld [vmem:[%s745_s3 + $0x20] sm:$0xff]   ;;  %v557_v33 = vld [vmem:[%s745_s3 + $0x18] sm:$0xff]   ;;  %v558_v34 = vld [vmem:[%s745_s3 + $0x10] sm:$0xff]  }
  0x1f   :  { %473 = vmatpush3.bf16.msra.mxu0 %v551_v25  ;;  %511 = vmatprep.subr.bf16.mxu1 %v587_v2  ;;  %v559_v35 = vld [vmem:[%s745_s3 + $0x8] sm:$0xff]   ;;  %v560_v36 = vld [vmem:[%s745_s3] sm:$0xff]  }
  0x20   :  { %v426_v41 = vld [vmem:[%s744_s2] ss:$0 sm:$0xff]  ;;  %s589_s2 = smov [#allocation2]  }
  0x21   :  { %v449_v51 = vld [vmem:[%s746_s4] ss:$0 sm:$0xff]  ;;  %s418_s8 = sshll.u32 %s589_s2, 4  ;;  %s419_s8 = int_to_ptr.vmem [resolvable:$true] %s418_s8 }
  0x22   :  { %240 = vmatmul.mubr.bf16.vlgmr.msra.gmra.mxu0 %v25_v29  ;;  %512 = vmatpush3.bf16.msra.mxu1 %v554_v30  ;;  %s565_s4 = scalar_lea.vmem %s419_s8, 128  ;;  %p570_p1 = scmp.lt.s32.totalorder %s419_s8, %s419_s8 }
  0x23   :  { %513 = vmatprep.subr.bf16.mxu1 %v587_v2  ;;  %p566_p0 = scmp.ne.s32.totalorder %s419_s8, %s565_s4  ;;  %p571_p2 = scmp.lt.s32.totalorder %s565_s4, %s565_s4 }
  0x25   :  { %p572_p3 = por %p571_p2, %p570_p1 }
  0x26   :  { %514 = vmatpush3.bf16.msra.mxu1 %v555_v31 }
  0x27   :  { %515 = vmatprep.subr.bf16.mxu1 %v587_v2  ;;  %p573_p4 = pnand %p572_p3, %p566_p0 }
  0x2a   :  { %516 = vmatpush3.bf16.msra.mxu1 %v556_v32 }
  0x2b   :  { %517 = vmatprep.subr.bf16.mxu1 %v587_v2 }
  0x2e   :  { %518 = vmatpush3.bf16.msra.mxu1 %v557_v33 }
  0x2f   :  { %519 = vmatprep.subr.bf16.mxu1 %v587_v2 }
  0x32   :  { %520 = vmatpush3.bf16.msra.mxu1 %v558_v34 }
  0x33   :  { %521 = vmatprep.subr.bf16.mxu1 %v587_v2 }
  0x36   :  { %522 = vmatpush3.bf16.msra.mxu1 %v559_v35 }
  0x37   :  { %523 = vmatprep.subr.bf16.mxu1 %v587_v2 }
  0x3a   :  { %524 = vmatpush3.bf16.msra.mxu1 %v560_v36 }
  0xdd   :  { %v281_v37 = vpop.f32.mrf.mxu1 }
  0xdf   :  { %v507_v38 = vpop.f32.mrf.mxu1 }
  0xe1   :  { %v284_v40 = vpop.f32.mrf.mxu1 }
  0xe2   :  { %v474_v39 = vpop.f32.mrf.mxu0 }
  0xe3   :  { %v508_v43 = vpop.f32.mrf.mxu1 }
  0xe4   :  { %v475_v42 = vpop.f32.mrf.mxu0 }
  0xe5   :  { %v476_v44 = vadd.f32 %v475_v42, %v474_v39 }
  0xe6   :  { %v477_v45 = vpop.f32.mrf.mxu0 }
  0xe7   :  { %v242_v46 = vadd.f32 %v476_v44, %v426_v41 }
  0xe8   :  { %v478_v47 = vpop.f32.mrf.mxu0 }
  0xe9   :  { %v282_v48 = vadd.f32 %v281_v37, %v242_v46 }
  0xeb   :  { %v287_v49 = vmax.f32 %v282_v48, 0.0 }
  0xed   :  { %v288_v50 = vpack.c.bf16 %v287_v49, %v287_v49 }
  0xef   :  { %526 = vmatmul.mubr.bf16.vlgmr.msra.gmra.mxu1 %v288_v50 }
 0x1af   :  { %v394_v52 = vpop.f32.mrf.mxu1 }
 0x1b0   :  { %v395_v53 = vadd.f32 %v449_v51, %v394_v52 }
 0x1b1   :  { %v527_v54 = vpop.f32.mrf.mxu1 }
 0x1b2   :  { %400 = vmax.xlane.f32.xlu0 %v395_v53 }
 0x1b3   :  { %v397_v55 = vpop.f32.mrf.mxu1 }
 0x1b5   :  { %v528_v56 = vpop.f32.mrf.mxu1 }
 0x23b   :  { %v401_v57 = vpop.xlane.xlu0 %400 }
 0x23c   :  { %v402_v58 = vsub.f32 %v395_v53, %v401_v57 }
 0x23e   :  { %v403_v59 = vmul.f32 1.442695, %v402_v58 }
 0x240   :  { %561 = vpow2.f32 %v403_v59 }
 0x24d   :  { %v562_v60 = vpop.eup %561 }
 0x24e   :  { %405 = vadd.xlane.f32.xlu0 %v562_v60 }
 0x2d7   :  { %v406_v61 = vpop.xlane.xlu0 %405 }
 0x2d8   :  { %563 = vlog2.f32 %v406_v61 }
 0x2e5   :  { %v564_v62 = vpop.eup %563 }
 0x2e6   :  { %v408_v63 = vmul.f32 0.6931472, %v564_v62 }
 0x2e8   :  { %v409_v0 = vsub.f32 %v402_v58, %v408_v63 }
 0x2ea   :  { %411 = vst.msk [vmem:[#allocation2] sm:$0xff] %vm410_vm3, %v409_v0 }
 0x2eb   :  { %576 = shalt.err (!%p573_p4)
}
 0x2ec   :  { %421 = dma.vmem_to_hbm [thread:$0]  %s419_s8, 128, %s747_s5, [#allocation3]  }
 0x2ed   :  { %585 = dma.done.wait [#allocation3], 128  }
 0x2ee   :  { %586 = vsyncadd [#allocation3], 4294967168 }
 0x2ef   :  { %425 = vsyncpa [#allocation3], 1 }

</bundles_post_ra>
